<compile_context>
chip_gen: v5e
topology: v5e:2x2
jax: 0.10.0
libtpu: 0.0.40
codegen_flags: <defaults>
</compile_context>

<pallas_src>
import jax
import jax.numpy as jnp
from jax.experimental import pallas as pl
from jax.experimental.pallas import tpu as pltpu


def _round_up(x, m):
    return ((x + m - 1) // m) * m


def classifier_kernel(x_ref, w1_ref, b1_ref, w2_ref, b2_ref, out_ref):
    """One batch tile of: Linear -> ReLU -> Linear.

    x:  [TB, Ep] (f32)    w1: [Ep, Hp] (bf16)   b1: [1, Hp] (f32)
    w2: [Hp, Tp] (bf16)   b2: [1, Tp] (f32)     out: [TB, Tp] (out dtype)
    """
    # In-kernel cast to the MXU compute dtype (VPU work, hidden behind DMA).
    x = x_ref[...].astype(w1_ref.dtype)
    # First GEMM on the MXU with f32 accumulation; bias + ReLU in f32 on VPU.
    mid = jnp.dot(x, w1_ref[...], preferred_element_type=jnp.float32)
    mid = jnp.maximum(mid + b1_ref[...], 0.0)
    # Second GEMM: cast activation back to weight dtype (bf16) for MXU peak.
    out = jnp.dot(mid.astype(w2_ref.dtype), w2_ref[...],
                  preferred_element_type=jnp.float32)
    out_ref[...] = (out + b2_ref[...]).astype(out_ref.dtype)


def prepare_classifier_params(w1, b1, w2, b2, compute_dtype=jnp.bfloat16):
    """Pad E/H/T to multiples of 128 and cast weights to bf16 ONCE
    (model-load time). Biases stay f32 (bias-add / ReLU run in f32)."""
    E, H = w1.shape
    T = w2.shape[1]
    Ep, Hp, Tp = _round_up(E, 128), _round_up(H, 128), _round_up(T, 128)
    # Zero padding is exact: padded K columns contribute 0 to the dot products;
    # padded output columns get 0 weight + 0 bias -> 0 logits (sliced off).
    w1p = jnp.zeros((Ep, Hp), compute_dtype).at[:E, :H].set(
        w1.astype(compute_dtype))
    w2p = jnp.zeros((Hp, Tp), compute_dtype).at[:H, :T].set(
        w2.astype(compute_dtype))
    b1p = jnp.zeros((1, Hp), jnp.float32).at[0, :H].set(b1.astype(jnp.float32))
    b2p = jnp.zeros((1, Tp), jnp.float32).at[0, :T].set(b2.astype(jnp.float32))
    return {"w1": w1p, "b1": b1p, "w2": w2p, "b2": b2p,
            "E": E, "H": H, "T": T}


def classifier_forward(x, params, *, block_b=256, min_grid_steps=4,
                       out_dtype=jnp.bfloat16):
    """y = relu(x @ w1 + b1) @ w2 + b2 with pre-padded/cached params.

    x: [B, E] float32; params from prepare_classifier_params. Returns [B, T]."""
    w1p, b1p, w2p, b2p = params["w1"], params["b1"], params["w2"], params["b2"]
    E, T = params["E"], params["T"]
    Ep, Hp = w1p.shape
    Tp = w2p.shape[1]
    B = x.shape[0]

    # Batch tile: enough grid steps that each TensorCore (v7x megacore) gets
    # >= 2 pipelined iterations, without creating a near-empty tail tile.
    n_tiles = min(max(pl.cdiv(B, block_b), min_grid_steps), pl.cdiv(B, 8))
    TB = _round_up(pl.cdiv(B, n_tiles), 8)

    # Keep the double-buffered working set well under the scoped-VMEM default
    # (32 MiB on v6e/v7x, 16 MiB on v5e): shrink TB if needed.
    w_bytes = ((w1p.size + w2p.size) * w1p.dtype.itemsize
               + (b1p.size + b2p.size) * 4)
    out_isize = jnp.dtype(out_dtype).itemsize

    def footprint(tb):
        return (2 * tb * Ep * x.dtype.itemsize      # x double buffer
                + 2 * tb * Tp * out_isize           # out double buffer
                + w_bytes)                          # resident weights

    while TB > 8 and footprint(TB) > 12 * 2**20:
        TB = max(8, _round_up(TB // 2, 8))

    Bp = _round_up(B, TB)

    # x goes straight into pallas_call (cast happens in-kernel); only pad when
    # the batch or embed dim actually requires it.
    if Bp != B or Ep != E:
        xk = jnp.zeros((Bp, Ep), x.dtype).at[:B, :E].set(x)
    else:
        xk = x

    grid = (Bp // TB,)

    cost = pl.CostEstimate(
        flops=2 * Bp * (Ep * Hp + Hp * Tp),
        transcendentals=0,
        bytes_accessed=(xk.size * xk.dtype.itemsize + w_bytes
                        + Bp * Tp * out_isize))

    out = pl.pallas_call(
        classifier_kernel,
        out_shape=jax.ShapeDtypeStruct((Bp, Tp), out_dtype),
        grid=grid,
        in_specs=[
            # Activation stream: one batch tile per grid step (double-buffered).
            pl.BlockSpec((TB, Ep), lambda i: (i, 0)),
            # Weights / biases: constant index_map -> DMA'd once, VMEM-resident.
            pl.BlockSpec((Ep, Hp), lambda i: (0, 0)),
            pl.BlockSpec((1, Hp), lambda i: (0, 0)),
            pl.BlockSpec((Hp, Tp), lambda i: (0, 0)),
            pl.BlockSpec((1, Tp), lambda i: (0, 0)),
        ],
        out_specs=pl.BlockSpec((TB, Tp), lambda i: (i, 0)),
        compiler_params=pltpu.CompilerParams(
            # Batch tiles are independent -> shard across both TCs on v7x.
            dimension_semantics=("parallel",)),
        cost_estimate=cost,
    )(xk, w1p, b1p, w2p, b2p)

    if Bp != B:
        out = out[:B]
    if Tp != T:
        out = out[:, :T]
    return out


def intent_model_forward(cls_hidden, params):
    """IntentModel.forward after the encoder: dropout (identity at inference)
    followed by the Classifier MLP, implemented as a single fused Pallas kernel."""
    # TODO(synk): the pretrained BERT encoder (self.encoder) and the
    # F.normalize(embeddings) side-output are not translated; this implements
    # dropout (identity in eval mode) + Classifier on the CLS hidden state.
    return classifier_forward(cls_hidden, params)


if __name__ == "__main__":
    # Shapes implied by the module: embed_dim = BERT hidden size (768, a lane
    # multiple -> no x padding/copy), plus hidden_dim and target_size.
    batch = 512          # grid becomes (4,) batch tiles of 128 rows
    embed_dim = 768
    hidden_dim = 128
    target_size = 16     # padded to 128 lanes inside prepare_classifier_params

    key = jax.random.PRNGKey(0)
    kx, kw1, kb1, kw2, kb2 = jax.random.split(key, 5)

    x = jax.random.normal(kx, (batch, embed_dim), dtype=jnp.float32)
    # Parameters built directly as [in, out] (PyTorch stores [out, in]).
    w1 = jax.random.normal(kw1, (embed_dim, hidden_dim), jnp.float32) * 0.05
    b1 = jax.random.normal(kb1, (hidden_dim,), jnp.float32) * 0.05
    w2 = jax.random.normal(kw2, (hidden_dim, target_size), jnp.float32) * 0.05
    b2 = jax.random.normal(kb2, (target_size,), jnp.float32) * 0.05

    # Weight/bias padding + bf16 cast done ONCE (model-load time), then reused.
    params = prepare_classifier_params(w1, b1, w2, b2)

    logit = intent_model_forward(x, params)
    jax.block_until_ready(logit)
    assert logit.shape == (batch, target_size)
    assert logit.dtype == jnp.bfloat16

    lf = logit.astype(jnp.float32)

    # Reference 1: same bf16 casts as the kernel, f32 accumulation (tight tol).
    xb, w1b, w2b = (a.astype(jnp.bfloat16) for a in (x, w1, w2))
    mid = jnp.maximum(
        jnp.dot(xb, w1b, preferred_element_type=jnp.float32) + b1, 0.0)
    ref_bf16 = (jnp.dot(mid.astype(jnp.bfloat16), w2b,
                        preferred_element_type=jnp.float32) + b2)
    ref_bf16 = ref_bf16.astype(jnp.bfloat16).astype(jnp.float32)
    assert jnp.allclose(lf, ref_bf16, atol=2e-2, rtol=2e-2), \
        float(jnp.max(jnp.abs(lf - ref_bf16)))

    # Reference 2: full-f32 PyTorch math (loose tol for bf16 MXU inputs/output).
    ref_f32 = jnp.maximum(x @ w1 + b1, 0.0) @ w2 + b2
    assert jnp.allclose(lf, ref_f32, atol=1e-1, rtol=1e-1), \
        float(jnp.max(jnp.abs(lf - ref_f32)))

    print("KERNEL_OK")
</pallas_src>

<mosaic_0001>
module attributes {stable_mosaic.version = 11 : i64} {
  func.func @classifier_kernel(%arg0: i32, %arg1: memref<128x768xf32, #tpu.memory_space<vmem>>, %arg2: memref<768x128xbf16, #tpu.memory_space<vmem>>, %arg3: memref<1x128xf32, #tpu.memory_space<vmem>>, %arg4: memref<128x128xbf16, #tpu.memory_space<vmem>>, %arg5: memref<1x128xf32, #tpu.memory_space<vmem>>, %arg6: memref<128x128xbf16, #tpu.memory_space<vmem>>) attributes {dimension_semantics = [#tpu.dimension_semantics<parallel>], iteration_bounds = array<i64: 4>, scalar_prefetch = 0 : i64, scratch_operands = 0 : i64, tpu.core_type = #tpu.core_type<tc>, window_params = [{transform_indices = @transform_0, window_bounds = array<i64: 128, 768>}, {pipeline_mode = #tpu.pipeline_mode<synchronous>, transform_indices = @transform_1, window_bounds = array<i64: 768, 128>}, {pipeline_mode = #tpu.pipeline_mode<synchronous>, transform_indices = @transform_2, window_bounds = array<i64: 1, 128>}, {pipeline_mode = #tpu.pipeline_mode<synchronous>, transform_indices = @transform_3, window_bounds = array<i64: 128, 128>}, {pipeline_mode = #tpu.pipeline_mode<synchronous>, transform_indices = @transform_4, window_bounds = array<i64: 1, 128>}, {transform_indices = @transform_5, window_bounds = array<i64: 128, 128>}]} {
    %c0 = arith.constant 0 : index
    %c0_0 = arith.constant 0 : index
    %0 = vector.load %arg1[%c0, %c0_0] : memref<128x768xf32, #tpu.memory_space<vmem>>, vector<128x768xf32>
    %1 = arith.truncf %0 : vector<128x768xf32> to vector<128x768xbf16>
    %c0_1 = arith.constant 0 : index
    %c0_2 = arith.constant 0 : index
    %2 = vector.load %arg2[%c0_1, %c0_2] : memref<768x128xbf16, #tpu.memory_space<vmem>>, vector<768x128xbf16>
    %cst = arith.constant dense<0.000000e+00> : vector<128x128xf32>
    %3 = tpu.matmul %1, %2, %cst {dimension_numbers = #tpu.dot_dimension_numbers<[1], [0], [0], [1], [0, 0, 1, 1], [], []>} : vector<128x768xbf16>, vector<768x128xbf16>, vector<128x128xf32> -> vector<128x128xf32>
    %c0_3 = arith.constant 0 : index
    %c0_4 = arith.constant 0 : index
    %4 = vector.load %arg3[%c0_3, %c0_4] : memref<1x128xf32, #tpu.memory_space<vmem>>, vector<1x128xf32>
    %5 = vector.broadcast %4 : vector<1x128xf32> to vector<128x128xf32>
    %6 = arith.addf %3, %5 : vector<128x128xf32>
    %cst_5 = arith.constant 0.000000e+00 : f32
    %7 = vector.broadcast %cst_5 : f32 to vector<128x128xf32>
    %8 = arith.maximumf %6, %7 : vector<128x128xf32>
    %9 = arith.truncf %8 : vector<128x128xf32> to vector<128x128xbf16>
    %c0_6 = arith.constant 0 : index
    %c0_7 = arith.constant 0 : index
    %10 = vector.load %arg4[%c0_6, %c0_7] : memref<128x128xbf16, #tpu.memory_space<vmem>>, vector<128x128xbf16>
    %cst_8 = arith.constant dense<0.000000e+00> : vector<128x128xf32>
    %11 = tpu.matmul %9, %10, %cst_8 {dimension_numbers = #tpu.dot_dimension_numbers<[1], [0], [0], [1], [0, 0, 1, 1], [], []>} : vector<128x128xbf16>, vector<128x128xbf16>, vector<128x128xf32> -> vector<128x128xf32>
    %c0_9 = arith.constant 0 : index
    %c0_10 = arith.constant 0 : index
    %12 = vector.load %arg5[%c0_9, %c0_10] : memref<1x128xf32, #tpu.memory_space<vmem>>, vector<1x128xf32>
    %13 = vector.broadcast %12 : vector<1x128xf32> to vector<128x128xf32>
    %14 = arith.addf %11, %13 : vector<128x128xf32>
    %15 = arith.truncf %14 : vector<128x128xf32> to vector<128x128xbf16>
    %c0_11 = arith.constant 0 : index
    %c0_12 = arith.constant 0 : index
    %16 = vector.load %arg6[%c0_11, %c0_12] : memref<128x128xbf16, #tpu.memory_space<vmem>>, vector<128x128xbf16>
    tpu.vector_store %arg6[%c0_11, %c0_12], %15 {strides = array<i32>} : memref<128x128xbf16, #tpu.memory_space<vmem>>, vector<128x128xbf16>,
    return
  }
  func.func @transform_0(%arg0: i32) -> (i32, i32) {
    %c0_i32 = arith.constant 0 : i32
    %c0_i32_0 = arith.constant 0 : i32
    return %arg0, %c0_i32 : i32, i32
  }
  func.func @transform_1(%arg0: i32) -> (i32, i32) {
    %c0_i32 = arith.constant 0 : i32
    %c0_i32_0 = arith.constant 0 : i32
    %c0_i32_1 = arith.constant 0 : i32
    return %c0_i32, %c0_i32_0 : i32, i32
  }
  func.func @transform_2(%arg0: i32) -> (i32, i32) {
    %c0_i32 = arith.constant 0 : i32
    %c0_i32_0 = arith.constant 0 : i32
    %c0_i32_1 = arith.constant 0 : i32
    return %c0_i32, %c0_i32_0 : i32, i32
  }
  func.func @transform_3(%arg0: i32) -> (i32, i32) {
    %c0_i32 = arith.constant 0 : i32
    %c0_i32_0 = arith.constant 0 : i32
    %c0_i32_1 = arith.constant 0 : i32
    return %c0_i32, %c0_i32_0 : i32, i32
  }
  func.func @transform_4(%arg0: i32) -> (i32, i32) {
    %c0_i32 = arith.constant 0 : i32
    %c0_i32_0 = arith.constant 0 : i32
    %c0_i32_1 = arith.constant 0 : i32
    return %c0_i32, %c0_i32_0 : i32, i32
  }
  func.func @transform_5(%arg0: i32) -> (i32, i32) {
    %c0_i32 = arith.constant 0 : i32
    %c0_i32_0 = arith.constant 0 : i32
    return %arg0, %c0_i32 : i32, i32
  }
}

</mosaic_0001>

<bundles_post_ra>
// kernel: tpu_custom_call.1
= control target key start
LH: loop header
LB: loop body
LE: loop exit
PB: predicated region body
PF: predicated region fallthrough
CT: control target
= control target key end

     0   :  { %s2580_s0 = inlined_call_operand.hbm [shape: f32[512,768], index: 0, kind: input, shape index: {}]   ;;  %s2581_s1 = inlined_call_operand.hbm [shape: bf16[768,128], index: 1, kind: input, shape index: {}]   ;;  %s2582_s2 = inlined_call_operand.hbm [shape: f32[1,128], index: 2, kind: input, shape index: {}]   ;;  %s2583_s3 = inlined_call_operand.hbm [shape: bf16[128,128], index: 3, kind: input, shape index: {}]   ;;  %s2584_s4 = inlined_call_operand.hbm [shape: f32[1,128], index: 4, kind: input, shape index: {}]   ;;  %s2585_s5 = inlined_call_operand.hbm [shape: bf16[512,128], index: 5, kind: output, shape index: {}]  }
   0x1   :  { %2586 = sst [smem:[#allocation16_spill]] %s2581_s1 }
   0x2   :  { %10 = vsyncpa [#allocation3], 0 }
   0x3   :  { %12 = vsyncpa [#allocation3 + $0x1], 0 }
   0x4   :  { %13 = vsyncpa [#allocation6], 0 }
   0x5   :  { %14 = vsyncpa [#allocation9], 0 }
   0x6   :  { %15 = vsyncpa [#allocation4], 0 }
   0x7   :  { %17 = vsyncpa [#allocation4 + $0x1], 0  ;;  %s2173_s18 = smov 0   ;;  %s2175_s19 = smov 0  }
   0x8   :  { %s2177_s20 = smov 0   ;;  %s2179_s21 = smov 0  }
   0x9 LB: > { %s2194_s22 = sadd.s32 4294967295, %s2131_s21   ;;  %s1436_s23 = sadd.s32 4294967294, %s2131_s21   ;;  %s2131_s21 = sphi %s2179_s21, %s2597_s21   ;;  %s2127_s20 = sphi %s2177_s20, %s2596_s20   ;;  %s2123_s19 = sphi %s2175_s19, %s2595_s19   ;;  %s2119_s18 = sphi %s2173_s18, %s2594_s18  }
   0xa   : > { %p43_p0 = scmp.ne.s32.totalorder %s2123_s19, %s2119_s18  ;;  %p44_p1 = scmp.eq.s32.totalorder %s2194_s22, 0 }
   0xb   : > { %p151_p2 = scmp.eq.s32.totalorder %s2194_s22, 3  ;;  %p157_p3 = scmp.eq.s32.totalorder %s1436_s23, 3 }
   0xc   : > { %p2203_p4 = por %p44_p1, %p43_p0  ;;  %p1437_p5 = scmp.ge.s32.totalorder %s2131_s21, 1 }
   0xd   : > { %p2208_p6 = por %p157_p3, %p43_p0  ;;  %p164_p7 = scmp.lt.s32.totalorder %s2131_s21, 5 }
   0xe   : > { %s2589_s1 = sld [smem:[#allocation16_spill]]  ;;  %s2133_s30 = smov [#allocation5]  }
   0xf   : > { %p2216_p8 = pnand %p1437_p5, %p164_p7  ;;  %s177_s6 = sshll.u32 %s2133_s30, 4  ;;  %s178_s6 = int_to_ptr.vmem [resolvable:$true] %s177_s6 }
  0x10   : > { %s201_s10 = sshll.u32 %s2583_s3, 4  ;;  %s2134_s11 = smov 64   ;;  %s202_s10 = int_to_ptr.hbm [resolvable:$true] %s201_s10 }
  0x11   : > { %p1832_p9 = pneg %p2216_p8  ;;  %s2135_s12 = smov 4  }
  0x12   : > { %s2136_s13 = smov [#allocation8]   ;;  %s190_s17 = sshll.u32 %s2582_s2, 4  ;;  %s191_s17 = int_to_ptr.hbm [resolvable:$true] %s190_s17 }
  0x13   : > { %p2224_p10 = pnand %p1832_p9, %p44_p1  ;;  %s203_s14 = sshll.u32 %s2136_s13, 4  ;;  %s204_s14 = int_to_ptr.vmem [resolvable:$true] %s203_s14 }
  0x14   : > { %s175_s28 = sshll.u32 %s2589_s1, 4  ;;  %s216_s27 = sshll.u32 %s2584_s4, 4  ;;  %s176_s28 = int_to_ptr.hbm [resolvable:$true] %s175_s28  ;;  %s217_s27 = int_to_ptr.hbm [resolvable:$true] %s216_s27 }
  0x15   : > { %1835 = dma.hbm_to_vmem [thread:$0]  (!%p2224_p10), %s176_s28, 6144, %s178_s6, [#allocation6], %s2134_s11, %s2134_s11, %s2135_s12  }
  0x16   : > { %1841 = dma.hbm_to_vmem [thread:$0]  (!%p2224_p10), %s202_s10, 1024, %s204_s14, [#allocation9], %s2134_s11, %s2134_s11, %s2135_s12  }
  0x17   : > { %s2137_s28 = smov [#allocation7]   ;;  %s2138_s6 = smov [#allocation10]  }
  0x18   : > { %s192_s30 = sshll.u32 %s2137_s28, 4  ;;  %s218_s8 = sshll.u32 %s2138_s6, 4  ;;  %s193_s30 = int_to_ptr.vmem [resolvable:$true] %s192_s30  ;;  %s219_s8 = int_to_ptr.vmem [resolvable:$true] %s218_s8 }
  0x19   : > { %1838 = dma.hbm_to_vmem [thread:$0]  (!%p2224_p10), %s191_s17, 16, %s193_s30, [#allocation6]  }
  0x1a   : > { %1844 = dma.hbm_to_vmem [thread:$0]  (!%p2224_p10), %s217_s27, 16, %s219_s8, [#allocation9]  }
  0x1b   : > { %s2246_s9 = sadd.s32 1, %s2131_s21   ;;  %s30_s10 = sadd.s32 1, %s2127_s20 }
  0x1c   : > { %s27_s11 = ssub.s32 %s2131_s21, %s2246_s9  ;;  %p37_p11 = scmp.ne.s32.totalorder %s2127_s20, %s2123_s19 }
  0x1d   : > { %p28_p12 = scmp.eq.s32.totalorder %s27_s11, 0  ;;  %p38_p13 = scmp.eq.s32.totalorder %s2131_s21, 0 }
  0x1e   : > { %p2256_p0 = por %p151_p2, %p37_p11  ;;  %p1857_p3 = scmp.lt.s32.totalorder %s2131_s21, 4 }
  0x1f   : > { %s2262_s13 = scalar_select %p28_p12, %s2127_s20, %s30_s10  }
  0x20   : > { %p39_p5 = por %p38_p13, %p37_p11  ;;  %s229_s14 = sand.u32 1, %s2127_s20  }
  0x21   : > { %s1809_s7 = smul.u32 768, %s229_s14  ;;  %s230_s6 = scalar_lea.sflag [#allocation3], %s229_s14 }
  0x22   : > { %s1810_s15 = smul.u32 768, %s2131_s21  ;;  %p2266_p7 = pnand %p1857_p3, %p39_p5 }
  0x23   : > { %s233_s27 = scalar_lea.vmem [#allocation2], %s1809_s7  ;;  %s2034_s17 = scalar_lea.hbm %s2580_s0, 3072 }
  0x24   : > { %s239_s26 = scalar_lea.hbm %s2580_s0, %s1810_s15  ;;  %s242_s28 = sshll.u32 %s233_s27, 4  ;;  %s243_s28 = int_to_ptr.vmem [resolvable:$true] %s242_s28 }
  0x25   : > { %s240_s30 = sshll.u32 %s239_s26, 4  ;;  %p2031_p9 = pneg %p2266_p7  ;;  %s241_s30 = int_to_ptr.hbm [resolvable:$true] %s240_s30 }
  0x26   : > { %s2027_s8 = sshra.s32 %s241_s30, 4  ;;  %s2028_s8 = int_to_ptr.hbm [resolvable:$true] %s2027_s8 }
  0x27   : > { %s2029_s10 = scalar_lea.hbm %s2028_s8, 768  ;;  %p2035_p12 = scmp.lt.s32.totalorder %s2028_s8, %s2580_s0 }
  0x28   : > { %p2030_p2 = scmp.ne.s32.totalorder %s2028_s8, %s2029_s10  ;;  %p2036_p13 = scmp.lt.s32.totalorder %s2034_s17, %s2029_s10 }
  0x2a   : > { %p2032_p10 = pnand %p2031_p9, %p2030_p2  ;;  %p2037_p3 = por %p2036_p13, %p2035_p12 }
  0x2c   : > { %p2033_p11 = pneg %p2032_p10 }
  0x2e   : > { %p2038_p5 = pnand %p2037_p3, %p2033_p11 }
  0x30   : > { %2041 = shalt.err (!%p2038_p5)
}
  0x31   : > { %s2139_s14 = smov 768   ;;  %s2140_s7 = smov 48  }
  0x32   : > { %1848 = dma.hbm_to_vmem [thread:$0]  (!%p2266_p7), %s241_s30, 12288, %s243_s28, %s230_s6, %s2139_s14, %s2139_s14, %s2140_s7  }
  0x33   : > { %254 = sbr.rel (%p2216_p8) target bundleno = 599 (0x257), region = 40  ;;  %s2286_s1 = sand.u32 (!%p2216_p8), 1, %s2123_s19  }
  0x34   : > { %s1811_s26 = smul.u32 (!%p2216_p8), 768, %s2286_s1  ;;  %s257_s27 = scalar_lea.sflag (!%p2216_p8), [#allocation3], %s2286_s1 }
  0x36   : > { %s2290_s8 = scalar_lea.vmem (!%p2216_p8), [#allocation2], %s1811_s26 }
  0x38   : > { %2102 = dma.done.wait (%p2203_p4), %s257_s27, 12288  }
  0x39   : > { %2104 = vsyncadd (%p2203_p4), %s257_s27, 4294955008 }
  0x3a   : > { %2106 = dma.done.wait (%p44_p1), [#allocation6], 6160  }
  0x3b   : > { %2108 = vsyncadd (%p44_p1), [#allocation6], 4294961136 }
  0x3c   : > { %2110 = dma.done.wait (%p44_p1), [#allocation9], 1040  }
  0x3d   : > { %2112 = vsyncadd (%p44_p1), [#allocation9], 4294966256  ;;  %v1688_v0 = vld [vmem:[#allocation5 + $0x38] sm:$0xff]  ;;  %v1687_v3 = vld [vmem:[#allocation5 + $0x30] sm:$0xff]  ;;  %s1451_s24 = sshll.u32 %s2286_s1, 6  ;;  %s1737_s16 = sshll.u32 %s2194_s22, 6 }
  0x3e   : > { %v2304_v1 = vld [vmem:[#allocation5 + $0x78] sm:$0xff]  ;;  %842 = vmatpush.bf16.msra.mxu0 %v1688_v0  ;;  %1785 = vmatpush.bf16.msra.mxu3 %v1688_v0  ;;  %v2310_v4 = vld [vmem:[#allocation5 + $0x70] sm:$0xff]  ;;  %v1686_v6 = vld [vmem:[#allocation5 + $0x28] sm:$0xff]  ;;  %s2537_s29 = scalar_lea.vmem [#allocation11], %s1451_s24  ;;  %s1321_s6 = scalar_lea.hbm %s2585_s5, %s1737_s16 }
  0x3f   : > { %v2306_v2 = vld [vmem:[#allocation5 + $0xb8] sm:$0xff]  ;;  %1793 = vmatpush.bf16.msra.mxu1 %v2304_v1  ;;  %v2312_v5 = vld [vmem:[#allocation5 + $0xb0] sm:$0xff]  ;;  %v2316_v7 = vld [vmem:[#allocation5 + $0x68] sm:$0xff]  ;;  %s1322_s10 = sshll.u32 %s2537_s29, 4  ;;  %s1324_s11 = sshll.u32 %s1321_s6, 4  ;;  %s1323_s10 = int_to_ptr.vmem [resolvable:$true] %s1322_s10  ;;  %s1325_s11 = int_to_ptr.hbm [resolvable:$true] %s1324_s11 }
  0x40   : > { %1801 = vmatpush.bf16.msra.mxu2 %v2306_v2  ;;  %v2318_v8 = vld [vmem:[#allocation5 + $0xa8] sm:$0xff]  ;;  %v1685_v9 = vld [vmem:[#allocation5 + $0x20] sm:$0xff]  ;;  %v1684_v12 = vld [vmem:[#allocation5 + $0x18] sm:$0xff]  ;;  %s1310_s17 = scalar_lea.sflag [#allocation4], %s2286_s1  ;;  %s2071_s23 = sshra.s32 %s1325_s11, 4  ;;  %s2072_s23 = int_to_ptr.hbm [resolvable:$true] %s2071_s23 }
  0x41   : > { %v2322_v10 = vld [vmem:[#allocation5 + $0x60] sm:$0xff]  ;;  %v2328_v13 = vld [vmem:[#allocation5 + $0x58] sm:$0xff]  ;;  %v1683_v15 = vld [vmem:[#allocation5 + $0x10] sm:$0xff]  ;;  %s2073_s15 = scalar_lea.hbm %s2072_s23, 64  ;;  %s2077_s7 = scalar_lea.hbm %s2585_s5, 256 }
  0x42   : > { %843 = vmatpush.bf16.msra.mxu0 %v1687_v3  ;;  %1786 = vmatpush.bf16.msra.mxu3 %v1687_v3  ;;  %v2324_v11 = vld [vmem:[#allocation5 + $0xa0] sm:$0xff]  ;;  %v2330_v14 = vld [vmem:[#allocation5 + $0x98] sm:$0xff]  ;;  %v2334_v16 = vld [vmem:[#allocation5 + $0x50] sm:$0xff]  ;;  %p2074_p1 = scmp.ne.s32.totalorder %s2072_s23, %s2073_s15  ;;  %p2078_p7 = scmp.lt.s32.totalorder %s2072_s23, %s2585_s5 }
  0x43   : > { %1794 = vmatpush.bf16.msra.mxu1 %v2310_v4  ;;  %v2336_v17 = vld [vmem:[#allocation5 + $0x90] sm:$0xff]  ;;  %v1682_v18 = vld [vmem:[#allocation5 + $0x8] sm:$0xff]  ;;  %v1681_v21 = vld [vmem:[#allocation5] sm:$0xff]  ;;  %p2079_p2 = scmp.lt.s32.totalorder %s2077_s7, %s2073_s15 }
  0x44   : > { %1802 = vmatpush.bf16.msra.mxu2 %v2312_v5  ;;  %v2340_v19 = vld [vmem:[#allocation5 + $0x48] sm:$0xff]  ;;  %v2344_v22 = vld [vmem:[#allocation5 + $0x40] sm:$0xff]  ;;  %v316_v24 = vld [vmem:[%s2290_s8 + $0x30] sm:$0xff]  ;;  %p2075_p4 = pnand %p2074_p1, %p2256_p0 }
  0x45   : > { %v2342_v20 = vld [vmem:[#allocation5 + $0x88] sm:$0xff]  ;;  %v310_v23 = vld [vmem:[%s2290_s8] sm:$0xff]  ;;  %v340_v26 = vld [vmem:[%s2290_s8 + $0xf0] sm:$0xff]  ;;  %p2080_p9 = por %p2079_p2, %p2078_p7 }
  0x46   : > { %844 = vmatpush.bf16.msra.mxu0 %v1686_v6  ;;  %1787 = vmatpush.bf16.msra.mxu3 %v1686_v6  ;;  %v334_v25 = vld [vmem:[%s2290_s8 + $0xc0] sm:$0xff]  ;;  %v1712_v27 = vld [vmem:[#allocation5 + $0xf8] sm:$0xff]  ;;  %v335_v28 = vld [vmem:[%s2290_s8 + $0xc8] sm:$0xff]  ;;  %v406_v33 = vpack.c.bf16 %v316_v24, %v310_v23  ;;  %p2076_p8 = pneg %p2075_p4 }
  0x47   : > { %1795 = vmatpush.bf16.msra.mxu1 %v2316_v7  ;;  %v341_v29 = vld [vmem:[%s2290_s8 + $0xf8] sm:$0xff]  ;;  %v2354_v30 = vld [vmem:[#allocation5 + $0x80] sm:$0xff]  ;;  %v336_v31 = vld [vmem:[%s2290_s8 + $0xd0] sm:$0xff]  ;;  %v418_v34 = vpack.c.bf16 %v340_v26, %v334_v25 }
  0x48   : > { %1803 = vmatpush.bf16.msra.mxu2 %v2318_v8  ;;  %v342_v32 = vld [vmem:[%s2290_s8 + $0x100] sm:$0xff]  ;;  %v419_v35 = vpack.c.bf16 %v341_v29, %v335_v28  ;;  %v1728_v37 = vld [vmem:[#allocation5 + $0x178] sm:$0xff]  ;;  %v1711_v38 = vld [vmem:[#allocation5 + $0xf0] sm:$0xff]  ;;  %p2081_p10 = pnand %p2080_p9, %p2076_p8 }
  0x49   : > { %v420_v36 = vpack.c.bf16 %v342_v32, %v336_v31  ;;  %v1727_v39 = vld [vmem:[#allocation5 + $0x170] sm:$0xff]  ;;  %v1710_v40 = vld [vmem:[#allocation5 + $0xe8] sm:$0xff]  ;;  %v1709_v42 = vld [vmem:[#allocation5 + $0xe0] sm:$0xff] }
  0x4a   : > { %845 = vmatpush.bf16.msra.mxu0 %v1685_v9  ;;  %1788 = vmatpush.bf16.msra.mxu3 %v1685_v9  ;;  %v1726_v41 = vld [vmem:[#allocation5 + $0x168] sm:$0xff]  ;;  %v322_v43 = vld [vmem:[%s2290_s8 + $0x60] sm:$0xff]  ;;  %v328_v44 = vld [vmem:[%s2290_s8 + $0x90] sm:$0xff] }
  0x4b   : > { %1796 = vmatpush.bf16.msra.mxu1 %v2322_v10  ;;  %v346_v45 = vld [vmem:[%s2290_s8 + $0x120] sm:$0xff]  ;;  %v352_v46 = vld [vmem:[%s2290_s8 + $0x150] sm:$0xff]  ;;  %v347_v47 = vld [vmem:[%s2290_s8 + $0x128] sm:$0xff]  ;;  %v412_v52 = vpack.c.bf16 %v328_v44, %v322_v43 }
  0x4c   : > { %1804 = vmatpush.bf16.msra.mxu2 %v2324_v11  ;;  %v353_v48 = vld [vmem:[%s2290_s8 + $0x158] sm:$0xff]  ;;  %v1725_v49 = vld [vmem:[#allocation5 + $0x160] sm:$0xff]  ;;  %v348_v50 = vld [vmem:[%s2290_s8 + $0x130] sm:$0xff]  ;;  %v424_v53 = vpack.c.bf16 %v352_v46, %v346_v45 }
  0x4d   : > { %v354_v51 = vld [vmem:[%s2290_s8 + $0x160] sm:$0xff]  ;;  %v425_v54 = vpack.c.bf16 %v353_v48, %v347_v47  ;;  %v1708_v56 = vld [vmem:[#allocation5 + $0xd8] sm:$0xff]  ;;  %v1707_v58 = vld [vmem:[#allocation5 + $0xd0] sm:$0xff] }
  0x4e   : > { %846 = vmatpush.bf16.msra.mxu0 %v1684_v12  ;;  %1789 = vmatpush.bf16.msra.mxu3 %v1684_v12  ;;  %v426_v55 = vpack.c.bf16 %v354_v51, %v348_v50  ;;  %v1724_v57 = vld [vmem:[#allocation5 + $0x158] sm:$0xff]  ;;  %v358_v59 = vld [vmem:[%s2290_s8 + $0x180] sm:$0xff]  ;;  %v364_v60 = vld [vmem:[%s2290_s8 + $0x1b0] sm:$0xff] }
  0x4f   : > { %1797 = vmatpush.bf16.msra.mxu1 %v2328_v13  ;;  %v311_v61 = vld [vmem:[%s2290_s8 + $0x8] sm:$0xff]  ;;  %v317_v62 = vld [vmem:[%s2290_s8 + $0x38] sm:$0xff]  ;;  %v366_v3 = vld [vmem:[%s2290_s8 + $0x1c0] sm:$0xff] }
  0x50   : > { %1805 = vmatpush.bf16.msra.mxu2 %v2330_v14  ;;  %v359_v63 = vld [vmem:[%s2290_s8 + $0x188] sm:$0xff]  ;;  %v365_v0 = vld [vmem:[%s2290_s8 + $0x1b8] sm:$0xff]  ;;  %v407_v6 = vpack.c.bf16 %v317_v62, %v311_v61  ;;  %v1721_v26 = vld [vmem:[#allocation5 + $0x140] sm:$0xff] }
  0x51   : > { %v1706_v12 = vld [vmem:[#allocation5 + $0xc8] sm:$0xff]  ;;  %v388_v28 = vld [vmem:[%s2290_s8 + $0x270] sm:$0xff]  ;;  %v389_v32 = vld [vmem:[%s2290_s8 + $0x278] sm:$0xff] }
  0x52   : > { %847 = vmatpush.bf16.msra.mxu0 %v1683_v15  ;;  %1790 = vmatpush.bf16.msra.mxu3 %v1683_v15  ;;  %v323_v15 = vld [vmem:[%s2290_s8 + $0x68] sm:$0xff]  ;;  %v312_v29 = vld [vmem:[%s2290_s8 + $0x10] sm:$0xff]  ;;  %v330_v44 = vld [vmem:[%s2290_s8 + $0xa0] sm:$0xff] }
  0x53   : > { %1798 = vmatpush.bf16.msra.mxu1 %v2334_v16  ;;  %v383_v31 = vld [vmem:[%s2290_s8 + $0x248] sm:$0xff]  ;;  %v324_v43 = vld [vmem:[%s2290_s8 + $0x70] sm:$0xff]  ;;  %v401_v46 = vld [vmem:[%s2290_s8 + $0x2d8] sm:$0xff] }
  0x54   : > { %1806 = vmatpush.bf16.msra.mxu2 %v2336_v17  ;;  %v395_v45 = vld [vmem:[%s2290_s8 + $0x2a8] sm:$0xff]  ;;  %v1715_v47 = vld [vmem:[#allocation5 + $0x110] sm:$0xff]  ;;  %v414_v51 = vpack.c.bf16 %v330_v44, %v324_v43  ;;  %v321_v61 = vld [vmem:[%s2290_s8 + $0x58] sm:$0xff] }
  0x55   : > { %v396_v48 = vld [vmem:[%s2290_s8 + $0x2b0] sm:$0xff] }
  0x56   : > { %848 = vmatpush.bf16.msra.mxu0 %v1682_v18  ;;  %1791 = vmatpush.bf16.msra.mxu3 %v1682_v18  ;;  %v371_v18 = vld [vmem:[%s2290_s8 + $0x1e8] sm:$0xff] }
  0x57   : > { %1799 = vmatpush.bf16.msra.mxu1 %v2340_v19  ;;  %v1734_v43 = vld [vmem:[#allocation8 + $0x28] sm:$0xff] }
  0x58   : > { %1807 = vmatpush.bf16.msra.mxu2 %v2342_v20 }
  0x5a   : > { %849 = vmatpush.bf16.msra.mxu0 %v1681_v21  ;;  %1792 = vmatpush.bf16.msra.mxu3 %v1681_v21  ;;  %v372_v21 = vld [vmem:[%s2290_s8 + $0x1f0] sm:$0xff] }
  0x5b   : > { %1800 = vmatpush.bf16.msra.mxu1 %v2344_v22 }
  0x5c   : > { %1808 = vmatpush.bf16.msra.mxu2 %v2354_v30 }
  0x5d   : > { %850 = vmatmul.bf16.vlgmr.msra.gmra.mxu0 %v406_v33  ;;  %860 = vmatmul.bf16.vlgmr.msra.gmra.mxu3 %v418_v34  ;;  %v1719_v33 = vld [vmem:[#allocation5 + $0x130] sm:$0xff] }
  0x5e   : > { %989 = vmatpush.bf16.msrb.mxu3 %v1712_v27  ;;  %891 = vmatpush.bf16.msrb.mxu0 %v2304_v1  ;;  %v360_v1 = vld [vmem:[%s2290_s8 + $0x190] sm:$0xff]  ;;  %v382_v27 = vld [vmem:[%s2290_s8 + $0x240] sm:$0xff] }
  0x5f   : > { %909 = vmatmul.bf16.vlgmr.msra.gmra.mxu1 %v419_v35  ;;  %958 = vmatmul.bf16.vlgmr.msra.gmra.mxu2 %v420_v36  ;;  %v432_v9 = vpack.c.bf16 %v366_v3, %v360_v1  ;;  %v384_v34 = vld [vmem:[%s2290_s8 + $0x250] sm:$0xff]  ;;  %v390_v35 = vld [vmem:[%s2290_s8 + $0x280] sm:$0xff]  ;;  %v442_v36 = vpack.c.bf16 %v388_v28, %v382_v27  ;;  %v325_v1 = vld [vmem:[%s2290_s8 + $0x78] sm:$0xff] }
  0x60   : > { %1087 = vmatpush.bf16.msrb.mxu1 %v1728_v37  ;;  %v443_v37 = vpack.c.bf16 %v389_v32, %v383_v31  ;;  %v331_v3 = vld [vmem:[%s2290_s8 + $0xa8] sm:$0xff]  ;;  %v349_v31 = vld [vmem:[%s2290_s8 + $0x138] sm:$0xff] }
  0x61   : > { %v355_v32 = vld [vmem:[%s2290_s8 + $0x168] sm:$0xff] }
  0x62   : > { %892 = vmatpush.bf16.msrb.mxu0 %v2310_v4  ;;  %990 = vmatpush.bf16.msrb.mxu3 %v1711_v38  ;;  %v430_v4 = vpack.c.bf16 %v364_v60, %v358_v59  ;;  %v444_v38 = vpack.c.bf16 %v390_v35, %v384_v34  ;;  %v320_v59 = vld [vmem:[%s2290_s8 + $0x50] sm:$0xff]  ;;  %v315_v60 = vld [vmem:[%s2290_s8 + $0x28] sm:$0xff] }
  0x63   : > { %v356_v34 = vld [vmem:[%s2290_s8 + $0x170] sm:$0xff]  ;;  %v351_v35 = vld [vmem:[%s2290_s8 + $0x148] sm:$0xff] }
  0x64   : > { %1088 = vmatpush.bf16.msrb.mxu1 %v1727_v39  ;;  %v1717_v39 = vld [vmem:[#allocation5 + $0x120] sm:$0xff] }
  0x66   : > { %893 = vmatpush.bf16.msrb.mxu0 %v2316_v7  ;;  %991 = vmatpush.bf16.msrb.mxu3 %v1710_v40  ;;  %v431_v7 = vpack.c.bf16 %v365_v0, %v359_v63  ;;  %v1716_v40 = vld [vmem:[#allocation5 + $0x118] sm:$0xff]  ;;  %v411_v0 = vpack.c.bf16 %v321_v61, %v315_v60 }
  0x68   : > { %1089 = vmatpush.bf16.msrb.mxu1 %v1726_v41  ;;  %v394_v41 = vld [vmem:[%s2290_s8 + $0x2a0] sm:$0xff] }
  0x6a   : > { %894 = vmatpush.bf16.msrb.mxu0 %v2322_v10  ;;  %992 = vmatpush.bf16.msrb.mxu3 %v1709_v42  ;;  %v1723_v10 = vld [vmem:[#allocation5 + $0x150] sm:$0xff] }
  0x6b   : > { %v400_v42 = vld [vmem:[%s2290_s8 + $0x2d0] sm:$0xff] }
  0x6c   : > { %1090 = vmatpush.bf16.msrb.mxu1 %v1725_v49  ;;  %v402_v49 = vld [vmem:[%s2290_s8 + $0x2e0] sm:$0xff]  ;;  %v448_v50 = vpack.c.bf16 %v400_v42, %v394_v41 }
  0x6d   : > { %855 = vmatmul.bf16.gmra.mxu0 %v412_v52  ;;  %865 = vmatmul.bf16.gmra.mxu3 %v424_v53  ;;  %v449_v52 = vpack.c.bf16 %v401_v46, %v395_v45  ;;  %v450_v53 = vpack.c.bf16 %v402_v49, %v396_v48  ;;  %v361_v49 = vld [vmem:[%s2290_s8 + $0x198] sm:$0xff] }
  0x6e   : > { %895 = vmatpush.bf16.msrb.mxu0 %v2328_v13  ;;  %993 = vmatpush.bf16.msrb.mxu3 %v1708_v56  ;;  %v376_v13 = vld [vmem:[%s2290_s8 + $0x210] sm:$0xff]  ;;  %v313_v56 = vld [vmem:[%s2290_s8 + $0x18] sm:$0xff] }
  0x6f   : > { %914 = vmatmul.bf16.gmra.mxu1 %v425_v54  ;;  %963 = vmatmul.bf16.gmra.mxu2 %v426_v55  ;;  %v1714_v54 = vld [vmem:[#allocation5 + $0x108] sm:$0xff]  ;;  %v1713_v55 = vld [vmem:[#allocation5 + $0x100] sm:$0xff] }
  0x70   : > { %1091 = vmatpush.bf16.msrb.mxu1 %v1724_v57  ;;  %v319_v57 = vld [vmem:[%s2290_s8 + $0x48] sm:$0xff] }
  0x71   : > { %v409_v62 = vpack.c.bf16 %v319_v57, %v313_v56 }
  0x72   : > { %896 = vmatpush.bf16.msrb.mxu0 %v2334_v16  ;;  %994 = vmatpush.bf16.msrb.mxu3 %v1707_v58  ;;  %v329_v16 = vld [vmem:[%s2290_s8 + $0x98] sm:$0xff]  ;;  %v314_v58 = vld [vmem:[%s2290_s8 + $0x20] sm:$0xff] }
  0x73   : > { %v413_v24 = vpack.c.bf16 %v329_v16, %v323_v15  ;;  %v410_v63 = vpack.c.bf16 %v320_v59, %v314_v58  ;;  %v337_v15 = vld [vmem:[%s2290_s8 + $0xd8] sm:$0xff]  ;;  %v343_v16 = vld [vmem:[%s2290_s8 + $0x108] sm:$0xff] }
  0x74   : > { %1092 = vmatpush.bf16.msrb.mxu1 %v1723_v10  ;;  %v415_v10 = vpack.c.bf16 %v331_v3, %v325_v1 }
  0x76   : > { %897 = vmatpush.bf16.msrb.mxu0 %v2340_v19  ;;  %995 = vmatpush.bf16.msrb.mxu3 %v1706_v12  ;;  %v377_v19 = vld [vmem:[%s2290_s8 + $0x218] sm:$0xff] }
  0x7a   : > { %898 = vmatpush.bf16.msrb.mxu0 %v2344_v22  ;;  %v378_v22 = vld [vmem:[%s2290_s8 + $0x220] sm:$0xff] }
  0x7b   : > { %v438_v25 = vpack.c.bf16 %v378_v22, %v372_v21  ;;  %v339_v21 = vld [vmem:[%s2290_s8 + $0xe8] sm:$0xff]  ;;  %v345_v22 = vld [vmem:[%s2290_s8 + $0x118] sm:$0xff] }
  0x7d   : > { %870 = vmatmul.bf16.gmra.mxu3 %v430_v4  ;;  %899 = vmatmul.bf16.vlgmr.msrb.gmra.mxu0 %v407_v6  ;;  %v326_v4 = vld [vmem:[%s2290_s8 + $0x80] sm:$0xff]  ;;  %v332_v6 = vld [vmem:[%s2290_s8 + $0xb0] sm:$0xff] }
  0x7e   : > { %940 = vmatpush.bf16.msra.mxu0 %v2306_v2  ;;  %v370_v2 = vld [vmem:[%s2290_s8 + $0x1e0] sm:$0xff]  ;;  %v416_v12 = vpack.c.bf16 %v332_v6, %v326_v4 }
  0x7f   : > { %919 = vmatmul.bf16.gmra.mxu1 %v431_v7  ;;  %968 = vmatmul.bf16.gmra.mxu2 %v432_v9  ;;  %v436_v23 = vpack.c.bf16 %v376_v13, %v370_v2  ;;  %v327_v7 = vld [vmem:[%s2290_s8 + $0x88] sm:$0xff]  ;;  %v333_v9 = vld [vmem:[%s2290_s8 + $0xb8] sm:$0xff] }
  0x80   : > { %v417_v2 = vpack.c.bf16 %v333_v9, %v327_v7  ;;  %v1736_v13 = vld [vmem:[#allocation8 + $0x38] sm:$0xff] }
  0x81   : > { %1228 = vmatpush.bf16.msrb.mxu2 %v1736_v13  ;;  %v374_v13 = vld [vmem:[%s2290_s8 + $0x200] sm:$0xff] }
  0x82   : > { %941 = vmatpush.bf16.msra.mxu0 %v2312_v5  ;;  %v437_v5 = vpack.c.bf16 %v377_v19, %v371_v18  ;;  %v338_v18 = vld [vmem:[%s2290_s8 + $0xe0] sm:$0xff]  ;;  %v344_v19 = vld [vmem:[%s2290_s8 + $0x110] sm:$0xff] }
  0x86   : > { %942 = vmatpush.bf16.msra.mxu0 %v2318_v8  ;;  %v1722_v8 = vld [vmem:[#allocation5 + $0x148] sm:$0xff] }
  0x87   : > { %1093 = vmatpush.bf16.msrb.mxu1 %v1722_v8 }
  0x8a   : > { %943 = vmatpush.bf16.msra.mxu0 %v2324_v11  ;;  %v1705_v11 = vld [vmem:[#allocation5 + $0xc0] sm:$0xff] }
  0x8b   : > { %996 = vmatpush.bf16.msrb.mxu3 %v1705_v11  ;;  %1094 = vmatpush.bf16.msrb.mxu1 %v1721_v26  ;;  %v2434_v11 = vld [vmem:[#allocation7] ss:$0 sm:$0xff] }
  0x8d   : > { %875 = vmatmul.bf16.gmra.mxu3 %v436_v23  ;;  %904 = vmatmul.bf16.gmra.mxu0 %v413_v24  ;;  %v421_v23 = vpack.c.bf16 %v343_v16, %v337_v15  ;;  %v422_v24 = vpack.c.bf16 %v344_v19, %v338_v18  ;;  %v380_v15 = vld [vmem:[%s2290_s8 + $0x230] sm:$0xff]  ;;  %v375_v16 = vld [vmem:[%s2290_s8 + $0x208] sm:$0xff]  ;;  %v381_v18 = vld [vmem:[%s2290_s8 + $0x238] sm:$0xff] }
  0x8e   : > { %944 = vmatpush.bf16.msra.mxu0 %v2330_v14  ;;  %v1720_v14 = vld [vmem:[#allocation5 + $0x138] sm:$0xff] }
  0x8f   : > { %924 = vmatmul.bf16.gmra.mxu1 %v437_v5  ;;  %973 = vmatmul.bf16.gmra.mxu2 %v438_v25  ;;  %v423_v25 = vpack.c.bf16 %v345_v22, %v339_v21 }
  0x92   : > { %945 = vmatpush.bf16.msra.mxu0 %v2336_v17  ;;  %v318_v17 = vld [vmem:[%s2290_s8 + $0x40] sm:$0xff] }
  0x96   : > { %946 = vmatpush.bf16.msra.mxu0 %v2342_v20  ;;  %v408_v20 = vpack.c.bf16 %v318_v17, %v312_v29 }
  0x9a   : > { %947 = vmatpush.bf16.msra.mxu0 %v2354_v30  ;;  %v1718_v30 = vld [vmem:[#allocation5 + $0x128] sm:$0xff] }
  0x9d   : > { %880 = vmatmul.bf16.gmra.mxu3 %v442_v36  ;;  %948 = vmatmul.bf16.vlgmr.msra.gmra.mxu0 %v408_v20  ;;  %v357_v36 = vld [vmem:[%s2290_s8 + $0x178] sm:$0xff] }
  0x9e   : > { %1038 = vmatpush.bf16.msrb.mxu0 %v1720_v14  ;;  %v1735_v14 = vld [vmem:[#allocation8 + $0x30] sm:$0xff] }
  0x9f   : > { %929 = vmatmul.bf16.gmra.mxu1 %v443_v37  ;;  %978 = vmatmul.bf16.gmra.mxu2 %v444_v38  ;;  %v427_v38 = vpack.c.bf16 %v355_v32, %v349_v31 }
  0xa0   : > { %1229 = vmatpush.bf16.msrb.mxu2 %v1735_v14 }
  0xa2   : > { %1039 = vmatpush.bf16.msrb.mxu0 %v1719_v33  ;;  %v350_v33 = vld [vmem:[%s2290_s8 + $0x140] sm:$0xff] }
  0xa4   : > { %1230 = vmatpush.bf16.msrb.mxu2 %v1734_v43 }
  0xa6   : > { %1040 = vmatpush.bf16.msrb.mxu0 %v1718_v30  ;;  %v428_v30 = vpack.c.bf16 %v356_v34, %v350_v33 }
  0xaa   : > { %1041 = vmatpush.bf16.msrb.mxu0 %v1717_v39 }
  0xad   : > { %885 = vmatmul.bf16.gmra.mxu3 %v448_v50  ;;  %953 = vmatmul.bf16.gmra.mxu0 %v414_v51  ;;  %v1733_v50 = vld [vmem:[#allocation8 + $0x20] sm:$0xff] }
  0xae   : > { %1042 = vmatpush.bf16.msrb.mxu0 %v1716_v40  ;;  %v429_v40 = vpack.c.bf16 %v357_v36, %v351_v35  ;;  %v367_v51 = vld [vmem:[%s2290_s8 + $0x1c8] sm:$0xff]  ;;  %1231 = vmatpush.bf16.msrb.mxu2 %v1733_v50  ;;  %v385_v35 = vld [vmem:[%s2290_s8 + $0x258] sm:$0xff] }
  0xaf   : > { %934 = vmatmul.bf16.gmra.mxu1 %v449_v52  ;;  %983 = vmatmul.bf16.gmra.mxu2 %v450_v53  ;;  %v362_v52 = vld [vmem:[%s2290_s8 + $0x1a0] sm:$0xff]  ;;  %v368_v53 = vld [vmem:[%s2290_s8 + $0x1d0] sm:$0xff]  ;;  %v433_v59 = vpack.c.bf16 %v367_v51, %v361_v49  ;;  %v391_v36 = vld [vmem:[%s2290_s8 + $0x288] sm:$0xff] }
  0xb0   : > { %v434_v60 = vpack.c.bf16 %v368_v53, %v362_v52 }
  0xb2   : > { %1043 = vmatpush.bf16.msrb.mxu0 %v1715_v47 }
  0xb6   : > { %1044 = vmatpush.bf16.msrb.mxu0 %v1714_v54  ;;  %v363_v54 = vld [vmem:[%s2290_s8 + $0x1a8] sm:$0xff] }
  0xba   : > { %1045 = vmatpush.bf16.msrb.mxu0 %v1713_v55  ;;  %v369_v55 = vld [vmem:[%s2290_s8 + $0x1d8] sm:$0xff] }
  0xbd   : > { %997 = vmatmul.bf16.vlgmr.msrb.gmra.mxu3 %v409_v62  ;;  %1046 = vmatmul.bf16.vlgmr.msrb.gmra.mxu0 %v410_v63  ;;  %v435_v62 = vpack.c.bf16 %v369_v55, %v363_v54 }
  0xbf   : > { %1095 = vmatmul.bf16.vlgmr.msrb.gmra.mxu1 %v411_v0 }
  0xcd   : > { %1002 = vmatmul.bf16.gmra.mxu3 %v415_v10  ;;  %1051 = vmatmul.bf16.gmra.mxu0 %v416_v12  ;;  %v1732_v10 = vld [vmem:[#allocation8 + $0x18] sm:$0xff] }
  0xce   : > { %v373_v12 = vld [vmem:[%s2290_s8 + $0x1f8] sm:$0xff]  ;;  %1232 = vmatpush.bf16.msrb.mxu2 %v1732_v10 }
  0xcf   : > { %1100 = vmatmul.bf16.gmra.mxu1 %v417_v2  ;;  %v379_v2 = vld [vmem:[%s2290_s8 + $0x228] sm:$0xff] }
  0xda   : > { %v851_v5 = vpop.f32.mrf.mxu0 }
  0xdb   : > { %v852_v57 = vadd.f32 %v2434_v11, %v851_v5 }
  0xdc   : > { %v910_v8 = vpop.f32.mrf.mxu1 }
  0xdd   : > { %1007 = vmatmul.bf16.gmra.mxu3 %v421_v23  ;;  %1056 = vmatmul.bf16.gmra.mxu0 %v422_v24  ;;  %v439_v23 = vpack.c.bf16 %v379_v2, %v373_v12  ;;  %v440_v24 = vpack.c.bf16 %v380_v15, %v374_v13 }
  0xdf   : > { %1105 = vmatmul.bf16.gmra.mxu1 %v423_v25  ;;  %v441_v25 = vpack.c.bf16 %v381_v18, %v375_v16 }
  0xe0   : > { %v861_v26 = vpop.f32.mrf.mxu3 }
  0xe1   : > { %v862_v27 = vadd.f32 %v2434_v11, %v861_v26 }
  0xe2   : > { %v2437_v28 = vpop.f32.mrf.mxu0 }
  0xe3   : > { %v2439_v17 = vadd.f32 %v910_v8, %v862_v27  ;;  %v1731_v27 = vld [vmem:[#allocation8 + $0x10] sm:$0xff] }
  0xe4   : > { %v912_v29 = vpop.f32.mrf.mxu1  ;;  %1233 = vmatpush.bf16.msrb.mxu2 %v1731_v27 }
  0xe8   : > { %v863_v20 = vpop.f32.mrf.mxu3 }
  0xe9   : > { %v864_v37 = vadd.f32 %v2434_v11, %v863_v20  ;;  %v386_v20 = vld [vmem:[%s2290_s8 + $0x260] sm:$0xff] }
  0xea   : > { %v856_v39 = vpop.f32.mrf.mxu0 }
  0xeb   : > { %v2448_v42 = vadd.f32 %v912_v29, %v864_v37  ;;  %v857_v21 = vadd.f32 %v2434_v11, %v856_v39  ;;  %v392_v37 = vld [vmem:[%s2290_s8 + $0x290] sm:$0xff] }
  0xec   : > { %v915_v41 = vpop.f32.mrf.mxu1  ;;  %v446_v43 = vpack.c.bf16 %v392_v37, %v386_v20  ;;  %v959_v20 = vpop.f32.mrf.mxu2 }
  0xed   : > { %1012 = vmatmul.bf16.gmra.mxu3 %v427_v38  ;;  %1061 = vmatmul.bf16.gmra.mxu0 %v428_v30  ;;  %v387_v38 = vld [vmem:[%s2290_s8 + $0x268] sm:$0xff]  ;;  %v393_v30 = vld [vmem:[%s2290_s8 + $0x298] sm:$0xff] }
  0xef   : > { %1110 = vmatmul.bf16.gmra.mxu1 %v429_v40 }
  0xf0   : > { %v866_v44 = vpop.f32.mrf.mxu3 }
  0xf1   : > { %v867_v45 = vadd.f32 %v2434_v11, %v866_v44 }
  0xf2   : > { %v2451_v46 = vpop.f32.mrf.mxu0 }
  0xf3   : > { %v2453_v48 = vadd.f32 %v915_v41, %v867_v45  ;;  %v445_v41 = vpack.c.bf16 %v391_v36, %v385_v35  ;;  %v447_v45 = vpack.c.bf16 %v393_v30, %v387_v38 }
  0xf4   : > { %v917_v47 = vpop.f32.mrf.mxu1 }
  0xf8   : > { %v868_v56 = vpop.f32.mrf.mxu3 }
  0xf9   : > { %v869_v58 = vadd.f32 %v2434_v11, %v868_v56  ;;  %v397_v56 = vld [vmem:[%s2290_s8 + $0x2b8] sm:$0xff] }
  0xfa   : > { %v900_v61 = vpop.f32.mrf.mxu0 }
  0xfb   : > { %v2463_v63 = vadd.f32 %v900_v61, %v852_v57  ;;  %v2465_v1 = vadd.f32 %v917_v47, %v869_v58  ;;  %v1730_v47 = vld [vmem:[#allocation8 + $0x8] sm:$0xff]  ;;  %v398_v58 = vld [vmem:[%s2290_s8 + $0x2c0] sm:$0xff]  ;;  %v405_v61 = vld [vmem:[%s2290_s8 + $0x2f8] sm:$0xff] }
  0xfc   : > { %v920_v0 = vpop.f32.mrf.mxu1  ;;  %1234 = vmatpush.bf16.msrb.mxu2 %v1730_v47  ;;  %v403_v57 = vld [vmem:[%s2290_s8 + $0x2e8] sm:$0xff] }
  0xfd   : > { %1017 = vmatmul.bf16.gmra.mxu3 %v433_v59  ;;  %1066 = vmatmul.bf16.gmra.mxu0 %v434_v60  ;;  %v404_v59 = vld [vmem:[%s2290_s8 + $0x2f0] sm:$0xff]  ;;  %v399_v60 = vld [vmem:[%s2290_s8 + $0x2c8] sm:$0xff] }
  0xfe   : > { %v453_v12 = vpack.c.bf16 %v405_v61, %v399_v60 }
  0xff   : > { %1115 = vmatmul.bf16.gmra.mxu1 %v435_v62  ;;  %v1729_v62 = vld [vmem:[#allocation8] sm:$0xff] }
 0x100   : > { %v871_v3 = vpop.f32.mrf.mxu3  ;;  %1235 = vmatpush.bf16.msrb.mxu2 %v1729_v62 }
 0x101   : > { %v872_v4 = vadd.f32 %v2434_v11, %v871_v3 }
 0x102   : > { %v2468_v6 = vpop.f32.mrf.mxu0 }
 0x103   : > { %v2470_v9 = vadd.f32 %v920_v0, %v872_v4  ;;  %v451_v4 = vpack.c.bf16 %v403_v57, %v397_v56 }
 0x104   : > { %v922_v7 = vpop.f32.mrf.mxu1 }
 0x108   : > { %v873_v19 = vpop.f32.mrf.mxu3 }
 0x109   : > { %v874_v22 = vadd.f32 %v2434_v11, %v873_v19 }
 0x10a   : > { %v905_v5 = vpop.f32.mrf.mxu0 }
 0x10b   : > { %v2480_v8 = vadd.f32 %v905_v5, %v857_v21  ;;  %v2482_v26 = vadd.f32 %v922_v7, %v874_v22  ;;  %v452_v7 = vpack.c.bf16 %v404_v59, %v398_v58 }
 0x10c   : > { %v925_v14 = vpop.f32.mrf.mxu1 }
 0x10d   : > { %1022 = vmatmul.bf16.gmra.mxu3 %v439_v23  ;;  %1071 = vmatmul.bf16.gmra.mxu0 %v440_v24 }
 0x10f   : > { %1120 = vmatmul.bf16.gmra.mxu1 %v441_v25 }
 0x110   : > { %v876_v29 = vpop.f32.mrf.mxu3 }
 0x111   : > { %v877_v31 = vadd.f32 %v2434_v11, %v876_v29 }
 0x112   : > { %v2485_v32 = vpop.f32.mrf.mxu0 }
 0x113   : > { %v2487_v34 = vadd.f32 %v925_v14, %v877_v31  ;;  %v854_v31 = vadd.f32 %v2434_v11, %v2437_v28 }
 0x114   : > { %v927_v33 = vpop.f32.mrf.mxu1 }
 0x115   : > { %v903_v36 = vadd.f32 %v2468_v6, %v854_v31  ;;  %v859_v6 = vadd.f32 %v2434_v11, %v2451_v46 }
 0x117   : > { %v908_v57 = vadd.f32 %v2485_v32, %v859_v6 }
 0x118   : > { %v878_v39 = vpop.f32.mrf.mxu3 }
 0x119   : > { %v879_v40 = vadd.f32 %v2434_v11, %v878_v39 }
 0x11a   : > { %v949_v44 = vpop.f32.mrf.mxu0 }
 0x11b   : > { %v2496_v50 = vadd.f32 %v927_v33, %v879_v40  ;;  %v950_v27 = vadd.f32 %v949_v44, %v2463_v63  ;;  %v961_v44 = vpop.f32.mrf.mxu2 }
 0x11c   : > { %v930_v49 = vpop.f32.mrf.mxu1 }
 0x11d   : > { %1027 = vmatmul.bf16.gmra.mxu3 %v445_v41  ;;  %1076 = vmatmul.bf16.gmra.mxu0 %v446_v43 }
 0x11f   : > { %1125 = vmatmul.bf16.gmra.mxu1 %v447_v45 }
 0x120   : > { %v881_v51 = vpop.f32.mrf.mxu3 }
 0x121   : > { %v882_v52 = vadd.f32 %v2434_v11, %v881_v51 }
 0x122   : > { %v951_v53 = vpop.f32.mrf.mxu0 }
 0x123   : > { %v2499_v55 = vadd.f32 %v930_v49, %v882_v52  ;;  %v952_v37 = vadd.f32 %v951_v53, %v903_v36  ;;  %v964_v62 = vpop.f32.mrf.mxu2 }
 0x124   : > { %v932_v54 = vpop.f32.mrf.mxu1 }
 0x128   : > { %v883_v0 = vpop.f32.mrf.mxu3 }
 0x129   : > { %v884_v3 = vadd.f32 %v2434_v11, %v883_v0 }
 0x12a   : > { %v954_v10 = vpop.f32.mrf.mxu0 }
 0x12b   : > { %v2508_v13 = vadd.f32 %v932_v54, %v884_v3  ;;  %v955_v28 = vadd.f32 %v954_v10, %v2480_v8 }
 0x12c   : > { %v935_v2 = vpop.f32.mrf.mxu1 }
 0x12d   : > { %1032 = vmatmul.bf16.gmra.mxu3 %v451_v4  ;;  %1081 = vmatmul.bf16.gmra.mxu0 %v452_v7 }
 0x12f   : > { %1130 = vmatmul.bf16.gmra.mxu1 %v453_v12 }
 0x130   : > { %v886_v15 = vpop.f32.mrf.mxu3 }
 0x131   : > { %v887_v16 = vadd.f32 %v2434_v11, %v886_v15 }
 0x132   : > { %v956_v18 = vpop.f32.mrf.mxu0 }
 0x133   : > { %v2511_v21 = vadd.f32 %v935_v2, %v887_v16  ;;  %v957_v58 = vadd.f32 %v956_v18, %v908_v57  ;;  %v966_v18 = vpop.f32.mrf.mxu2 }
 0x134   : > { %v937_v19 = vpop.f32.mrf.mxu1 }
 0x138   : > { %v888_v22 = vpop.f32.mrf.mxu3 }
 0x139   : > { %v889_v23 = vadd.f32 %v2434_v11, %v888_v22  ;;  %v960_v11 = vadd.f32 %v959_v20, %v2439_v17  ;;  %v965_v20 = vadd.f32 %v964_v62, %v2453_v48 }
 0x13a   : > { %v1047_v24 = vpop.f32.mrf.mxu0 }
 0x13b   : > { %v2514_v5 = vadd.f32 %v937_v19, %v889_v23  ;;  %v962_v19 = vadd.f32 %v961_v44, %v2448_v42  ;;  %v967_v42 = vadd.f32 %v966_v18, %v2465_v1 }
 0x13c   : > { %v1096_v25 = vpop.f32.mrf.mxu1 }
 0x140   : > { %v998_v14 = vpop.f32.mrf.mxu3 }
 0x141   : > { %v999_v33 = vadd.f32 %v998_v14, %v950_v27 }
 0x142   : > { %v1049_v29 = vpop.f32.mrf.mxu0 }
 0x143   : > { %v1048_v38 = vadd.f32 %v1047_v24, %v999_v33  ;;  %v969_v33 = vpop.f32.mrf.mxu2 }
 0x144   : > { %v1098_v35 = vpop.f32.mrf.mxu1  ;;  %v970_v48 = vadd.f32 %v969_v33, %v2470_v9 }
 0x145   : > { %v1097_v41 = vadd.f32 %v1096_v25, %v1048_v38 }
 0x147   : > { %v1136_v49 = vmax.f32 %v1097_v41, 0.0 }
 0x148   : > { %v1000_v30 = vpop.f32.mrf.mxu3 }
 0x149   : > { %v1001_v39 = vadd.f32 %v1000_v30, %v952_v37 }
 0x14a   : > { %v1052_v40 = vpop.f32.mrf.mxu0 }
 0x14b   : > { %v1050_v43 = vadd.f32 %v1049_v29, %v1001_v39  ;;  %v971_v41 = vpop.f32.mrf.mxu2 }
 0x14c   : > { %v1101_v45 = vpop.f32.mrf.mxu1 }
 0x14d   : > { %v1099_v47 = vadd.f32 %v1098_v35, %v1050_v43 }
 0x14f   : > { %v1137_v63 = vmax.f32 %v1099_v47, 0.0 }
 0x150   : > { %v1003_v51 = vpop.f32.mrf.mxu3 }
 0x151   : > { %v1152_v52 = vpack.c.bf16 %v1137_v63, %v1136_v49  ;;  %v1004_v53 = vadd.f32 %v1003_v51, %v955_v28 }
 0x152   : > { %v1054_v54 = vpop.f32.mrf.mxu0 }
 0x153   : > { %1236 = vmatmul.bf16.vlgmr.msrb.gmra.mxu2 %v1152_v52  ;;  %v1053_v59 = vadd.f32 %v1052_v40, %v1004_v53  ;;  %v974_v53 = vpop.f32.mrf.mxu2 }
 0x154   : > { %v1103_v56 = vpop.f32.mrf.mxu1 }
 0x155   : > { %v1102_v7 = vadd.f32 %v1101_v45, %v1053_v59 }
 0x157   : > { %v1138_v10 = vmax.f32 %v1102_v7, 0.0 }
 0x158   : > { %v1005_v60 = vpop.f32.mrf.mxu3 }
 0x159   : > { %v1006_v61 = vadd.f32 %v1005_v60, %v957_v58  ;;  %v972_v58 = vadd.f32 %v971_v41, %v2482_v26 }
 0x15a   : > { %v1057_v0 = vpop.f32.mrf.mxu0 }
 0x15b   : > { %v1055_v3 = vadd.f32 %v1054_v54, %v1006_v61  ;;  %v976_v7 = vpop.f32.mrf.mxu2 }
 0x15c   : > { %v1106_v4 = vpop.f32.mrf.mxu1 }
 0x15d   : > { %v1104_v8 = vadd.f32 %v1103_v56, %v1055_v3 }
 0x15f   : > { %v1139_v12 = vmax.f32 %v1104_v8, 0.0 }
 0x160   : > { %v1008_v2 = vpop.f32.mrf.mxu3 }
 0x161   : > { %v1153_v46 = vpack.c.bf16 %v1139_v12, %v1138_v10  ;;  %v1009_v16 = vadd.f32 %v1008_v2, %v960_v11  ;;  %v975_v2 = vadd.f32 %v974_v53, %v2487_v34 }
 0x162   : > { %v1059_v15 = vpop.f32.mrf.mxu0 }
 0x163   : > { %1241 = vmatmul.bf16.gmra.mxu2 %v1153_v46  ;;  %v1058_v22 = vadd.f32 %v1057_v0, %v1009_v16  ;;  %v979_v26 = vpop.f32.mrf.mxu2 }
 0x164   : > { %v1108_v32 = vpop.f32.mrf.mxu1 }
 0x165   : > { %v1107_v29 = vadd.f32 %v1106_v4, %v1058_v22 }
 0x167   : > { %v1140_v35 = vmax.f32 %v1107_v29, 0.0 }
 0x168   : > { %v1010_v23 = vpop.f32.mrf.mxu3 }
 0x169   : > { %v1011_v24 = vadd.f32 %v1010_v23, %v962_v19 }
 0x16a   : > { %v1062_v25 = vpop.f32.mrf.mxu0 }
 0x16b   : > { %v1060_v14 = vadd.f32 %v1059_v15, %v1011_v24  ;;  %v981_v33 = vpop.f32.mrf.mxu2 }
 0x16c   : > { %v1111_v27 = vpop.f32.mrf.mxu1 }
 0x16d   : > { %v1109_v31 = vadd.f32 %v1108_v32, %v1060_v14  ;;  %v977_v32 = vadd.f32 %v976_v7, %v2496_v50  ;;  %v982_v50 = vadd.f32 %v981_v33, %v2508_v13 }
 0x16f   : > { %v1141_v36 = vmax.f32 %v1109_v31, 0.0 }
 0x170   : > { %v1013_v17 = vpop.f32.mrf.mxu3 }
 0x171   : > { %v1154_v37 = vpack.c.bf16 %v1141_v36, %v1140_v35  ;;  %v1014_v30 = vadd.f32 %v1013_v17, %v965_v20  ;;  %v980_v35 = vadd.f32 %v979_v26, %v2499_v55 }
 0x172   : > { %v1064_v38 = vpop.f32.mrf.mxu0 }
 0x173   : > { %1246 = vmatmul.bf16.gmra.mxu2 %v1154_v37  ;;  %v1063_v40 = vadd.f32 %v1062_v25, %v1014_v30 }
 0x174   : > { %v1113_v39 = vpop.f32.mrf.mxu1 }
 0x175   : > { %v1112_v44 = vadd.f32 %v1111_v27, %v1063_v40 }
 0x177   : > { %v1142_v28 = vmax.f32 %v1112_v44, 0.0 }
 0x178   : > { %v1015_v43 = vpop.f32.mrf.mxu3 }
 0x179   : > { %v1016_v45 = vadd.f32 %v1015_v43, %v967_v42  ;;  %v984_v42 = vpop.f32.mrf.mxu2 }
 0x17a   : > { %v1067_v47 = vpop.f32.mrf.mxu0  ;;  %v985_v55 = vadd.f32 %v984_v42, %v2511_v21 }
 0x17b   : > { %v1065_v49 = vadd.f32 %v1064_v38, %v1016_v45 }
 0x17c   : > { %v1116_v63 = vpop.f32.mrf.mxu1 }
 0x17d   : > { %v1114_v51 = vadd.f32 %v1113_v39, %v1065_v49 }
 0x17f   : > { %v1143_v52 = vmax.f32 %v1114_v51, 0.0 }
 0x180   : > { %v1018_v54 = vpop.f32.mrf.mxu3 }
 0x181   : > { %v1155_v6 = vpack.c.bf16 %v1143_v52, %v1142_v28  ;;  %v1019_v57 = vadd.f32 %v1018_v54, %v970_v48  ;;  %v986_v52 = vpop.f32.mrf.mxu2 }
 0x182   : > { %v1069_v56 = vpop.f32.mrf.mxu0  ;;  %v987_v13 = vadd.f32 %v986_v52, %v2514_v5 }
 0x183   : > { %1251 = vmatmul.bf16.gmra.mxu2 %v1155_v6  ;;  %v1068_v59 = vadd.f32 %v1067_v47, %v1019_v57 }
 0x184   : > { %v1118_v1 = vpop.f32.mrf.mxu1 }
 0x185   : > { %v1117_v4 = vadd.f32 %v1116_v63, %v1068_v59 }
 0x187   : > { %v1144_v10 = vmax.f32 %v1117_v4, 0.0 }
 0x188   : > { %v1020_v60 = vpop.f32.mrf.mxu3 }
 0x189   : > { %v1021_v61 = vadd.f32 %v1020_v60, %v972_v58 }
 0x18a   : > { %v1072_v62 = vpop.f32.mrf.mxu0 }
 0x18b   : > { %v1070_v0 = vadd.f32 %v1069_v56, %v1021_v61 }
 0x18c   : > { %v1121_v3 = vpop.f32.mrf.mxu1 }
 0x18d   : > { %v1119_v8 = vadd.f32 %v1118_v1, %v1070_v0 }
 0x18f   : > { %v1145_v12 = vmax.f32 %v1119_v8, 0.0 }
 0x190   : > { %v1023_v9 = vpop.f32.mrf.mxu3 }
 0x191   : > { %v1156_v11 = vpack.c.bf16 %v1145_v12, %v1144_v10  ;;  %v1024_v15 = vadd.f32 %v1023_v9, %v975_v2 }
 0x192   : > { %v1074_v46 = vpop.f32.mrf.mxu0 }
 0x193   : > { %1256 = vmatmul.bf16.gmra.mxu2 %v1156_v11  ;;  %v1073_v18 = vadd.f32 %v1072_v62, %v1024_v15  ;;  %v1906_v62 = vld [vmem:[#allocation10] ss:$0 sm:$0xff] }
 0x194   : > { %v1123_v16 = vpop.f32.mrf.mxu1 }
 0x195   : > { %v1122_v24 = vadd.f32 %v1121_v3, %v1073_v18 }
 0x197   : > { %v1146_v29 = vmax.f32 %v1122_v24, 0.0 }
 0x198   : > { %v1025_v19 = vpop.f32.mrf.mxu3 }
 0x199   : > { %v1026_v22 = vadd.f32 %v1025_v19, %v977_v32 }
 0x19a   : > { %v1077_v25 = vpop.f32.mrf.mxu0 }
 0x19b   : > { %v1075_v23 = vadd.f32 %v1074_v46, %v1026_v22 }
 0x19c   : > { %v1126_v27 = vpop.f32.mrf.mxu1 }
 0x19d   : > { %v1124_v14 = vadd.f32 %v1123_v16, %v1075_v23 }
 0x19f   : > { %v1147_v31 = vmax.f32 %v1124_v14, 0.0 }
 0x1a0   : > { %v1028_v34 = vpop.f32.mrf.mxu3 }
 0x1a1   : > { %v1157_v36 = vpack.c.bf16 %v1147_v31, %v1146_v29  ;;  %v1029_v17 = vadd.f32 %v1028_v34, %v980_v35 }
 0x1a2   : > { %v1079_v20 = vpop.f32.mrf.mxu0 }
 0x1a3   : > { %1261 = vmatmul.bf16.gmra.mxu2 %v1157_v36  ;;  %v1078_v37 = vadd.f32 %v1077_v25, %v1029_v17 }
 0x1a4   : > { %v1128_v38 = vpop.f32.mrf.mxu1 }
 0x1a5   : > { %v1127_v40 = vadd.f32 %v1126_v27, %v1078_v37 }
 0x1a7   : > { %v1148_v45 = vmax.f32 %v1127_v40, 0.0 }
 0x1a8   : > { %v1030_v30 = vpop.f32.mrf.mxu3 }
 0x1a9   : > { %v1031_v39 = vadd.f32 %v1030_v30, %v982_v50 }
 0x1aa   : > { %v1082_v49 = vpop.f32.mrf.mxu0 }
 0x1ab   : > { %v1080_v41 = vadd.f32 %v1079_v20, %v1031_v39 }
 0x1ac   : > { %v1131_v51 = vpop.f32.mrf.mxu1 }
 0x1ad   : > { %v1129_v43 = vadd.f32 %v1128_v38, %v1080_v41 }
 0x1af   : > { %v1149_v47 = vmax.f32 %v1129_v43, 0.0 }
 0x1b0   : > { %v1033_v63 = vpop.f32.mrf.mxu3 }
 0x1b1   : > { %v1158_v44 = vpack.c.bf16 %v1149_v47, %v1148_v45  ;;  %v1034_v28 = vadd.f32 %v1033_v63, %v985_v55 }
 0x1b2   : > { %v1084_v53 = vpop.f32.mrf.mxu0 }
 0x1b3   : > { %1266 = vmatmul.bf16.gmra.mxu2 %v1158_v44  ;;  %v1083_v54 = vadd.f32 %v1082_v49, %v1034_v28 }
 0x1b4   : > { %v1133_v1 = vpop.f32.mrf.mxu1 }
 0x1b5   : > { %v1132_v56 = vadd.f32 %v1131_v51, %v1083_v54 }
 0x1b7   : > { %v1150_v59 = vmax.f32 %v1132_v56, 0.0 }
 0x1b8   : > { %v1035_v48 = vpop.f32.mrf.mxu3 }
 0x1b9   : > { %v1036_v6 = vadd.f32 %v1035_v48, %v987_v13 }
 0x1bb   : > { %v1085_v57 = vadd.f32 %v1084_v53, %v1036_v6 }
 0x1bd   : > { %v1134_v58 = vadd.f32 %v1133_v1, %v1085_v57 }
 0x1bf   : > { %v1151_v60 = vmax.f32 %v1134_v58, 0.0 }
 0x1c1   : > { %v1159_v61 = vpack.c.bf16 %v1151_v60, %v1150_v59 }
 0x1c3   : > { %1271 = vmatmul.bf16.gmra.mxu2 %v1159_v61 }
 0x1d6   : > { %v1237_v21 = vpop.f32.mrf.mxu2 }
 0x1d7   : > { %v1238_v3 = vadd.f32 %v1906_v62, %v1237_v21 }
 0x1de   : > { %v1239_v0 = vpop.f32.mrf.mxu2 }
 0x1df   : > { %v1240_v4 = vadd.f32 %v1906_v62, %v1239_v0 }
 0x1e1   : > { %v1741_v7 = vpack.c.bf16 %v1240_v4, %v1238_v3 }
 0x1e3   : > { %1742 = vst [vmem:[%s2537_s29] sm:$0xff] %v1741_v7  }
 0x1e6   : > { %v1242_v5 = vpop.f32.mrf.mxu2 }
 0x1e7   : > { %v1243_v10 = vadd.f32 %v1906_v62, %v1242_v5 }
 0x1ee   : > { %v1244_v8 = vpop.f32.mrf.mxu2 }
 0x1ef   : > { %v1245_v12 = vadd.f32 %v1906_v62, %v1244_v8 }
 0x1f1   : > { %v1746_v9 = vpack.c.bf16 %v1245_v12, %v1243_v10 }
 0x1f3   : > { %1778 = vst [vmem:[%s2537_s29 + $0x8] sm:$0xff] %v1746_v9  }
 0x1f6   : > { %v1247_v2 = vpop.f32.mrf.mxu2 }
 0x1f7   : > { %v1248_v46 = vadd.f32 %v1906_v62, %v1247_v2 }
 0x1fe   : > { %v1249_v11 = vpop.f32.mrf.mxu2 }
 0x1ff   : > { %v1250_v15 = vadd.f32 %v1906_v62, %v1249_v11 }
 0x201   : > { %v1751_v16 = vpack.c.bf16 %v1250_v15, %v1248_v46 }
 0x203   : > { %1779 = vst [vmem:[%s2537_s29 + $0x10] sm:$0xff] %v1751_v16  }
 0x206   : > { %v1252_v26 = vpop.f32.mrf.mxu2 }
 0x207   : > { %v1253_v18 = vadd.f32 %v1906_v62, %v1252_v26 }
 0x20e   : > { %v1254_v32 = vpop.f32.mrf.mxu2 }
 0x20f   : > { %v1255_v19 = vadd.f32 %v1906_v62, %v1254_v32 }
 0x211   : > { %v1756_v22 = vpack.c.bf16 %v1255_v19, %v1253_v18 }
 0x213   : > { %1780 = vst [vmem:[%s2537_s29 + $0x18] sm:$0xff] %v1756_v22  }
 0x216   : > { %v1257_v23 = vpop.f32.mrf.mxu2 }
 0x217   : > { %v1258_v25 = vadd.f32 %v1906_v62, %v1257_v23 }
 0x21e   : > { %v1259_v24 = vpop.f32.mrf.mxu2 }
 0x21f   : > { %v1260_v14 = vadd.f32 %v1906_v62, %v1259_v24 }
 0x221   : > { %v1761_v27 = vpack.c.bf16 %v1260_v14, %v1258_v25 }
 0x223   : > { %1781 = vst [vmem:[%s2537_s29 + $0x20] sm:$0xff] %v1761_v27  }
 0x226   : > { %v1262_v29 = vpop.f32.mrf.mxu2 }
 0x227   : > { %v1263_v33 = vadd.f32 %v1906_v62, %v1262_v29 }
 0x22e   : > { %v1264_v31 = vpop.f32.mrf.mxu2 }
 0x22f   : > { %v1265_v34 = vadd.f32 %v1906_v62, %v1264_v31 }
 0x231   : > { %v1766_v35 = vpack.c.bf16 %v1265_v34, %v1263_v33 }
 0x233   : > { %1782 = vst [vmem:[%s2537_s29 + $0x28] sm:$0xff] %v1766_v35  }
 0x236   : > { %v1267_v36 = vpop.f32.mrf.mxu2 }
 0x237   : > { %v1268_v20 = vadd.f32 %v1906_v62, %v1267_v36 }
 0x23e   : > { %v1269_v17 = vpop.f32.mrf.mxu2 }
 0x23f   : > { %v1270_v50 = vadd.f32 %v1906_v62, %v1269_v17 }
 0x241   : > { %v1771_v37 = vpack.c.bf16 %v1270_v50, %v1268_v20 }
 0x243   : > { %1783 = vst [vmem:[%s2537_s29 + $0x30] sm:$0xff] %v1771_v37  }
 0x246   : > { %v1272_v38 = vpop.f32.mrf.mxu2 }
 0x247   : > { %v1273_v39 = vadd.f32 %v1906_v62, %v1272_v38 }
 0x24e   : > { %v1274_v30 = vpop.f32.mrf.mxu2 }
 0x24f   : > { %v1275_v42 = vadd.f32 %v1906_v62, %v1274_v30 }
 0x251   : > { %v1776_v40 = vpack.c.bf16 %v1275_v42, %v1273_v39 }
 0x253   : > { %1784 = vst [vmem:[%s2537_s29 + $0x38] sm:$0xff] %v1776_v40  }
 0x254   : > { %2084 = shalt.err (!%p2081_p10)
}
 0x255   : > { %s2141_s1 = smov 64   ;;  %s2142_s8 = smov 4  }
 0x256   : > { %1830 = dma.vmem_to_hbm [thread:$0]  (%p2256_p0), %s1323_s10, 1024, %s1325_s11, %s1310_s17, %s2141_s1, %s2141_s1, %s2142_s8  }
 0x257 PF: > { %p1862_p11 = scmp.ge.s32.totalorder %s2131_s21, 2  ;;  %s1339_s24 = sand.u32 1, %s2119_s18  }
 0x258   : > { %s1340_s29 = scalar_lea.sflag [#allocation4], %s1339_s24 }
 0x259   : > { %p1850_p12 = pnand %p1862_p11, %p2208_p6 }
 0x25b   : > { %p1851_p13 = pneg %p1850_p12 }
 0x25d   : > { %2114 = dma.done.wait (%p1851_p13), %s1340_s29, 1024  }
 0x25e   : > { %2116 = vsyncadd (%p1851_p13), %s1340_s29, 4294966272  ;;  %p20_p3 = scmp.ge.s32.totalorder %s2246_s9, 6   ;;  %s2594_s18 = smov %s2123_s19 }
 0x25f   : > { %s2595_s19 = smov %s2127_s20  ;;  %s2596_s20 = smov %s2262_s13 }
 0x260   : > { %s2597_s21 = smov %s2246_s9  ;;  %22 = sbr.rel (!%p20_p3) target bundleno = 9 (0x9), region = 101 }
 0x265   :  { %1346 = vsyncpa [#allocation3], 1 }
 0x266   :  { %1348 = vsyncpa [#allocation3 + $0x1], 1 }
 0x267   :  { %1349 = vsyncpa [#allocation6], 1 }
 0x268   :  { %1350 = vsyncpa [#allocation9], 1 }
 0x269   :  { %1351 = vsyncpa [#allocation4], 1 }
 0x26a   :  { %1353 = vsyncpa [#allocation4 + $0x1], 1 }

</bundles_post_ra>
